<compile_context>
chip_gen: v6e
topology: v6e:2x2x1
jax: 0.10.0
libtpu: 0.0.40
codegen_flags: <defaults>
</compile_context>

<pallas_src>
import functools

import jax
import jax.numpy as jnp
from jax.experimental import pallas as pl
from jax.experimental.pallas import tpu as pltpu


def _round_up(x: int, m: int) -> int:
    return (x + m - 1) // m * m


def _cdiv(a: int, b: int) -> int:
    return (a + b - 1) // b


def _default_tiles():
    """(tm, tn, tk, vmem_limit_bytes) per TPU generation."""
    kind = ""
    try:
        kind = jax.devices()[0].device_kind.lower()
    except Exception:
        pass
    if "v5 lite" in kind or "v5e" in kind or "v5lite" in kind:
        # ~7 MiB total VMEM at these tiles; 256 FLOP/byte > v5e's ~240 threshold.
        return 512, 1024, 512, 32 << 20
    if "v7" in kind:
        # v7x: only 64 MiB physical VMEM per TC; 341 FLOP/byte > ~310 threshold.
        return 512, 1024, 1024, 48 << 20
    if "v6" in kind:
        # v6e: ~28 MiB total; 683 FLOP/byte > ~650 threshold.
        return 1024, 2048, 1024, 64 << 20
    # Conservative default for unknown hardware.
    return 512, 1024, 1024, 48 << 20


def _float16_module_kernel(x_ref, w_ref, b_ref, o_ref, *, round_output_to_bf16: bool):
    """One (tm, tn) fp32 output tile, accumulated in place over the K grid axis.

    x_ref : [tm, tk] bf16  (Float16Module input, already cast fp32->bf16 in wrapper)
    w_ref : [tk, tn] bf16  (weight pre-transposed to [K, N] once in the wrapper)
    b_ref : [1,  tn] bf16
    o_ref : [tm, tn] fp32  (resident across K: index_map returns (i, j) for all k)
    """
    k = pl.program_id(2)
    nk = pl.num_programs(2)

    @pl.when(k == 0)
    def _():
        # Initialize the resident fp32 accumulator with the broadcast bias
        # (added in fp32, matching the add-in-fp32-then-round-to-bf16 reference).
        o_ref[...] = jnp.broadcast_to(b_ref[...].astype(jnp.float32), o_ref.shape)

    # Wrapped module forward in bf16 on the MXU, fp32 accumulation in place.
    o_ref[...] += jnp.dot(x_ref[...], w_ref[...], preferred_element_type=jnp.float32)

    @pl.when(k == nk - 1)
    def _():
        y = o_ref[...]
        if round_output_to_bf16:
            # Bit-faithful Float16Module parity: module output is bf16 ...
            y = y.astype(jnp.bfloat16)
        # float16_to_fp32: ... then upcast to fp32 for the last pipeline stage.
        o_ref[...] = y.astype(jnp.float32)


def float16_module_forward(x_f32, w_bf16, b_bf16, *,
                           tm: int | None = None,
                           tn: int | None = None,
                           tk: int | None = None,
                           round_output_to_bf16: bool = True):
    """x_f32: [B, S, H] fp32; w_bf16: [N, H] bf16 (torch Linear layout); b_bf16: [N] bf16."""
    B, S, H = x_f32.shape
    N, K = w_bf16.shape
    assert K == H, f"weight K={K} != hidden H={H}"
    M = B * S

    tm0, tn0, tk0, vmem_limit = _default_tiles()
    tm = tm if tm is not None else tm0
    tn = tn if tn is not None else tn0
    tk = tk if tk is not None else tk0

    # Clip tiles to the (padded) problem size; keep lane/sublane alignment.
    tm = min(tm, _round_up(M, 8))      # second-last dim: multiple of 8
    tn = min(tn, _round_up(N, 128))    # output last dim: lane-dense (>=128)
    tk = min(tk, _round_up(K, 128))    # contraction dim: multiple of 128

    # Keep >= 2 parallel output tiles when possible so both v7x TCs get work.
    if _cdiv(_round_up(M, 8), tm) * _cdiv(_round_up(N, 128), tn) < 2:
        if tn >= 256:
            tn = _round_up(tn // 2, 128)
        elif tm >= 16:
            tm = _round_up(tm // 2, 8)

    Mp, Np, Kp = _round_up(M, tm), _round_up(N, tn), _round_up(K, tk)

    # fp32_to_float16: the Float16Module input cast, done once in the wrapper so
    # the kernel streams bf16. Padding (when needed) is done on bf16 data only;
    # zero-filled K padding keeps the accumulation exact.
    x2d = x_f32.reshape(M, K).astype(jnp.bfloat16)
    if (Mp, Kp) != (M, K):
        x2d = jnp.pad(x2d, ((0, Mp - M), (0, Kp - K)))

    # One-time [N, K] -> [K, N] transpose, amortized over all Mp/tm reuses; lets
    # the kernel use a plain MXU dot (no per-step XLU transpose of the W tile).
    w_t = w_bf16.T
    if (Kp, Np) != (K, N):
        w_t = jnp.pad(w_t, ((0, Kp - K), (0, Np - N)))

    b2d = b_bf16.reshape(1, N)
    if Np != N:
        b2d = jnp.pad(b2d, ((0, 0), (0, Np - N)))

    grid = (Mp // tm, Np // tn, Kp // tk)   # K (reduction) innermost

    kernel = functools.partial(_float16_module_kernel,
                               round_output_to_bf16=round_output_to_bf16)

    cost = pl.CostEstimate(
        flops=2 * Mp * Np * Kp,
        transcendentals=0,
        bytes_accessed=Mp * Kp * 2 + Kp * Np * 2 + Mp * Np * 4,
    )

    out_padded = pl.pallas_call(
        kernel,
        out_shape=jax.ShapeDtypeStruct((Mp, Np), jnp.float32),
        grid=grid,
        in_specs=[
            pl.BlockSpec((tm, tk), lambda i, j, k: (i, k)),   # x (bf16)
            pl.BlockSpec((tk, tn), lambda i, j, k: (k, j)),   # W^T (bf16, [K, N])
            pl.BlockSpec((1, tn), lambda i, j, k: (0, j)),    # bias (bf16)
        ],
        out_specs=pl.BlockSpec((tm, tn), lambda i, j, k: (i, j)),
        compiler_params=pltpu.CompilerParams(
            dimension_semantics=("parallel", "parallel", "arbitrary"),
            vmem_limit_bytes=vmem_limit,
        ),
        cost_estimate=cost,
    )(x2d, w_t, b2d)

    return out_padded[:M, :N].reshape(B, S, N)


def reference_forward(x_f32, w_bf16, b_bf16):
    """Pure-JAX reference of Float16Module(Linear) forward."""
    x_bf16 = x_f32.astype(jnp.bfloat16)
    y = jnp.dot(x_bf16, w_bf16.T, preferred_element_type=jnp.float32)
    y_bf16 = (y + b_bf16.astype(jnp.float32)).astype(jnp.bfloat16)
    return y_bf16.astype(jnp.float32)


if __name__ == "__main__":
    key = jax.random.PRNGKey(0)
    kx, kw, kb = jax.random.split(key, 3)

    B, S, H, N = 2, 8, 32, 32

    # fp32 inputs (what the user hands to Float16Module.forward)
    x = jax.random.normal(kx, (B, S, H), dtype=jnp.float32)

    # Deterministic parameter init; module.bfloat16() casts params to bf16.
    w = (jax.random.normal(kw, (N, H), dtype=jnp.float32) * 0.05).astype(jnp.bfloat16)
    b = (jax.random.normal(kb, (N,), dtype=jnp.float32) * 0.05).astype(jnp.bfloat16)

    out = float16_module_forward(x, w, b)
    out = jax.block_until_ready(out)

    ref = reference_forward(x, w, b)
    assert out.dtype == jnp.float32
    assert out.shape == (B, S, N)
    assert jnp.allclose(out, ref, atol=1e-2, rtol=1e-2)

    print("KERNEL_OK")
</pallas_src>

<mosaic_0001>
module attributes {stable_mosaic.version = 11 : i64} {
  func.func @_float16_module_kernel(%arg0: i32, %arg1: i32, %arg2: i32, %arg3: memref<8x128xbf16, #tpu.memory_space<vmem>>, %arg4: memref<128x128xbf16, #tpu.memory_space<vmem>>, %arg5: memref<1x128xbf16, #tpu.memory_space<vmem>>, %arg6: memref<8x128xf32, #tpu.memory_space<vmem>>) attributes {dimension_semantics = [#tpu.dimension_semantics<parallel>, #tpu.dimension_semantics<parallel>, #tpu.dimension_semantics<arbitrary>], iteration_bounds = array<i64: 2, 1, 1>, scalar_prefetch = 0 : i64, scratch_operands = 0 : i64, tpu.core_type = #tpu.core_type<tc>, window_params = [{transform_indices = @transform_0, window_bounds = array<i64: 8, 128>}, {transform_indices = @transform_1, window_bounds = array<i64: 128, 128>}, {transform_indices = @transform_2, window_bounds = array<i64: 1, 128>}, {transform_indices = @transform_3, window_bounds = array<i64: 8, 128>}]} {
    %c0_i32 = arith.constant 0 : i32
    %0 = arith.cmpi eq, %arg2, %c0_i32 : i32
    %1 = arith.extui %0 : i1 to i32
    %c0_i32_0 = arith.constant 0 : i32
    %2 = arith.cmpi ne, %1, %c0_i32_0 : i32
    scf.if %2 {
      %c0_10 = arith.constant 0 : index
      %c0_11 = arith.constant 0 : index
      %12 = vector.load %arg5[%c0_10, %c0_11] : memref<1x128xbf16, #tpu.memory_space<vmem>>, vector<1x128xbf16>
      %13 = arith.extf %12 : vector<1x128xbf16> to vector<1x128xf32>
      %14 = vector.shape_cast %13 : vector<1x128xf32> to vector<1x128xf32>
      %15 = vector.broadcast %14 : vector<1x128xf32> to vector<8x128xf32>
      %c0_12 = arith.constant 0 : index
      %c0_13 = arith.constant 0 : index
      %16 = vector.load %arg6[%c0_12, %c0_13] : memref<8x128xf32, #tpu.memory_space<vmem>>, vector<8x128xf32>
      tpu.vector_store %arg6[%c0_12, %c0_13], %15 {strides = array<i32>} : memref<8x128xf32, #tpu.memory_space<vmem>>, vector<8x128xf32>,
    } else {
    }
    %c0 = arith.constant 0 : index
    %c0_1 = arith.constant 0 : index
    %3 = vector.load %arg6[%c0, %c0_1] : memref<8x128xf32, #tpu.memory_space<vmem>>, vector<8x128xf32>
    %c0_2 = arith.constant 0 : index
    %c0_3 = arith.constant 0 : index
    %4 = vector.load %arg3[%c0_2, %c0_3] : memref<8x128xbf16, #tpu.memory_space<vmem>>, vector<8x128xbf16>
    %c0_4 = arith.constant 0 : index
    %c0_5 = arith.constant 0 : index
    %5 = vector.load %arg4[%c0_4, %c0_5] : memref<128x128xbf16, #tpu.memory_space<vmem>>, vector<128x128xbf16>
    %cst = arith.constant dense<0.000000e+00> : vector<8x128xf32>
    %6 = tpu.matmul %4, %5, %cst {dimension_numbers = #tpu.dot_dimension_numbers<[1], [0], [0], [1], [0, 0, 1, 1], [], []>} : vector<8x128xbf16>, vector<128x128xbf16>, vector<8x128xf32> -> vector<8x128xf32>
    %7 = arith.addf %3, %6 : vector<8x128xf32>
    %c0_6 = arith.constant 0 : index
    %c0_7 = arith.constant 0 : index
    %8 = vector.load %arg6[%c0_6, %c0_7] : memref<8x128xf32, #tpu.memory_space<vmem>>, vector<8x128xf32>
    tpu.vector_store %arg6[%c0_6, %c0_7], %7 {strides = array<i32>} : memref<8x128xf32, #tpu.memory_space<vmem>>, vector<8x128xf32>,
    %c0_i32_8 = arith.constant 0 : i32
    %9 = arith.cmpi eq, %arg2, %c0_i32_8 : i32
    %10 = arith.extui %9 : i1 to i32
    %c0_i32_9 = arith.constant 0 : i32
    %11 = arith.cmpi ne, %10, %c0_i32_9 : i32
    scf.if %11 {
      %c0_10 = arith.constant 0 : index
      %c0_11 = arith.constant 0 : index
      %12 = vector.load %arg6[%c0_10, %c0_11] : memref<8x128xf32, #tpu.memory_space<vmem>>, vector<8x128xf32>
      %13 = arith.truncf %12 : vector<8x128xf32> to vector<8x128xbf16>
      %14 = arith.extf %13 : vector<8x128xbf16> to vector<8x128xf32>
      %c0_12 = arith.constant 0 : index
      %c0_13 = arith.constant 0 : index
      %15 = vector.load %arg6[%c0_12, %c0_13] : memref<8x128xf32, #tpu.memory_space<vmem>>, vector<8x128xf32>
      tpu.vector_store %arg6[%c0_12, %c0_13], %14 {strides = array<i32>} : memref<8x128xf32, #tpu.memory_space<vmem>>, vector<8x128xf32>,
    } else {
    }
    return
  }
  func.func @transform_0(%arg0: i32, %arg1: i32, %arg2: i32) -> (i32, i32) {
    %c0_i32 = arith.constant 0 : i32
    return %arg0, %arg2 : i32, i32
  }
  func.func @transform_1(%arg0: i32, %arg1: i32, %arg2: i32) -> (i32, i32) {
    %c0_i32 = arith.constant 0 : i32
    return %arg2, %arg1 : i32, i32
  }
  func.func @transform_2(%arg0: i32, %arg1: i32, %arg2: i32) -> (i32, i32) {
    %c0_i32 = arith.constant 0 : i32
    %c0_i32_0 = arith.constant 0 : i32
    return %c0_i32, %arg1 : i32, i32
  }
  func.func @transform_3(%arg0: i32, %arg1: i32, %arg2: i32) -> (i32, i32) {
    %c0_i32 = arith.constant 0 : i32
    return %arg0, %arg1 : i32, i32
  }
}

</mosaic_0001>

<bundles_post_ra>
// kernel: tpu_custom_call.1
= control target key start
LH: loop header
LB: loop body
LE: loop exit
PB: predicated region body
PF: predicated region fallthrough
CT: control target
= control target key end

     0   :  { %8 = vsyncpa [#allocation3], 0  ;;  %s987_s0 = inlined_call_operand.hbm [shape: bf16[16,128], index: 0, kind: input, shape index: {}]   ;;  %s988_s1 = inlined_call_operand.hbm [shape: bf16[128,128], index: 1, kind: input, shape index: {}]   ;;  %s989_s2 = inlined_call_operand.vmem [shape: bf16[1,128], index: 2, kind: input, shape index: {}]   ;;  %s990_s3 = inlined_call_operand.hbm [shape: f32[16,128], index: 3, kind: output, shape index: {}]  }
   0x1   :  { %10 = vsyncpa [#allocation3 + $0x1], 0 }
   0x2   :  { %11 = vsyncpa [#allocation6], 0 }
   0x3   :  { %12 = vsyncpa [#allocation4], 0 }
   0x4   :  { %14 = vsyncpa [#allocation4 + $0x1], 0  ;;  %s807_s12 = smov 0   ;;  %s809_s13 = smov 0  }
   0x5   :  { %s811_s14 = smov 0   ;;  %s813_s15 = smov 0  }
   0x6   :  { %s815_s16 = smov 0   ;;  %s817_s17 = smov 0  }
   0x7 LB: > { %s502_s18 = sadd.s32 4294967295, %s778_s17   ;;  %s503_s19 = sadd.s32 4294967294, %s778_s17   ;;  %s778_s17 = sphi %s817_s17, %s20_s17   ;;  %s774_s16 = sphi %s815_s16, %s1008_s16   ;;  %s770_s15 = sphi %s813_s15, %s1007_s15   ;;  %s766_s14 = sphi %s811_s14, %s1006_s14   ;;  %s762_s13 = sphi %s809_s13, %s1005_s13   ;;  %s758_s12 = sphi %s807_s12, %s1004_s12  }
   0x8   : > { %p61_p0 = scmp.ne.s32.totalorder %s762_s13, %s758_s12  ;;  %p841_p1 = scmp.eq.s32.totalorder %s502_s18, 0 }
   0x9   : > { %p845_p2 = scmp.eq.s32.totalorder %s502_s18, 1  ;;  %p147_p3 = scmp.eq.s32.totalorder %s503_s19, 1 }
   0xa   : > { %p851_p4 = por %p841_p1, %p61_p0  ;;  %p504_p5 = scmp.ge.s32.totalorder %s778_s17, 1 }
   0xb   : > { %p856_p6 = por %p147_p3, %p61_p0  ;;  %p154_p7 = scmp.lt.s32.totalorder %s778_s17, 3 }
   0xc   : > { %s994_s22 = scalar_select %p851_p4, 1, 0 }
   0xd   : > { %s995_s23 = scalar_select %p856_p6, 1, 0 }
   0xe   : > { %p861_p8 = pnand %p504_p5, %p154_p7  ;;  %s780_s25 = smov [#allocation5]  }
   0xf   : > { %s170_s26 = sshll.u32 %s780_s25, 4  ;;  %s39_s28 = sadd.s32 1, %s774_s16  ;;  %s171_s26 = int_to_ptr.vmem [resolvable:$true] %s170_s26 }
  0x10   : > { %p563_p9 = pneg %p861_p8  ;;  %s651_s29 = scalar_lea.vmem %s171_s26, 1024 }
  0x11   : > { %p652_p13 = scmp.ne.s32.totalorder %s171_s26, %s651_s29  ;;  %p659_p5 = scmp.lt.s32.totalorder %s171_s26, %s171_s26 }
  0x12   : > { %p870_p11 = pnand %p563_p9, %p841_p1  ;;  %p660_p7 = scmp.lt.s32.totalorder %s651_s29, %s651_s29 }
  0x14   : > { %p642_p12 = pneg %p870_p11  ;;  %p661_p6 = por %p660_p7, %p659_p5 }
  0x16   : > { %p654_p0 = pnand %p652_p13, %p642_p12 }
  0x18   : > { %p655_p3 = pneg %p654_p0 }
  0x1a   : > { %p662_p4 = pnand %p661_p6, %p655_p3 }
  0x1c   : > { %665 = shalt.err (!%p662_p4)
}
  0x1d   : > { %s781_s30 = smov 64   ;;  %s782_s4 = smov 4  }
  0x1e   : > { %566 = dma.hbm_to_vmem [thread:$0]  (!%p870_p11), %s988_s1, 1024, %s171_s26, [#allocation6], %s781_s30, %s781_s30, %s782_s4  }
  0x1f   : > { %p41_p6 = scmp.ge.s32.totalorder %s39_s28, 2  ;;  %s48_s7 = sadd.s32 1, %s766_s14 }
  0x20   : > { %p55_p4 = scmp.ne.s32.totalorder %s766_s14, %s762_s13  ;;  %p56_p9 = scmp.eq.s32.totalorder %s778_s17, 0 }
  0x21   : > { %s1010_s28 = smov (%p41_p6, %s39_s28), 0  ;;  %p576_p0 = scmp.lt.s32.totalorder %s778_s17, 2 }
  0x22   : > { %p888_p12 = por %p56_p9, %p55_p4  ;;  %p894_p13 = por %p845_p2, %p55_p4 }
  0x23   : > { %s43_s10 = ssub.s32 %s774_s16, %s1010_s28  ;;  %s190_s11 = sand.u32 1, %s766_s14  }
  0x24   : > { %p46_p11 = scmp.eq.s32.totalorder %s43_s10, 0  ;;  %s508_s18 = sshll.u32 %s190_s11, 2 }
  0x25   : > { %s509_s25 = sshll.u32 %s774_s16, 6  ;;  %s194_s30 = scalar_lea.vmem [#allocation2], %s508_s18 }
  0x26   : > { %s903_s19 = scalar_select %p46_p11, %s766_s14, %s48_s7  }
  0x27   : > { %s200_s29 = scalar_lea.hbm %s987_s0, %s509_s25  ;;  %s202_s4 = sshll.u32 %s194_s30, 4  ;;  %s203_s4 = int_to_ptr.vmem [resolvable:$true] %s202_s4 }
  0x28   : > { %p911_p2 = pnand %p576_p0, %p888_p12  ;;  %s191_s5 = scalar_lea.sflag [#allocation3], %s190_s11 }
  0x29   : > { %s679_s6 = scalar_lea.vmem %s203_s4, 64  ;;  %s783_s7 = smov [#allocation2]  }
  0x2a   : > { %p668_p3 = pneg %p911_p2  ;;  %p680_p5 = scmp.ne.s32.totalorder %s203_s4, %s679_s6 }
  0x2b   : > { %s684_s10 = sshll.u32 %s783_s7, 4  ;;  %s685_s10 = int_to_ptr.vmem [resolvable:$false] %s684_s10 }
  0x2c   : > { %p682_p7 = pnand %p680_p5, %p668_p3  ;;  %s686_s25 = scalar_lea.vmem %s685_s10, 128 }
  0x2d   : > { %p687_p4 = scmp.lt.s32.totalorder %s203_s4, %s685_s10  ;;  %p688_p9 = scmp.lt.s32.totalorder %s686_s25, %s679_s6 }
  0x2e   : > { %p683_p6 = pneg %p682_p7 }
  0x2f   : > { %p689_p11 = por %p688_p9, %p687_p4 }
  0x31   : > { %p690_p10 = pnand %p689_p11, %p683_p6 }
  0x33   : > { %693 = shalt.err (!%p690_p10)
}
  0x34   : > { %570 = dma.hbm_to_vmem [thread:$0]  (!%p911_p2), %s200_s29, 64, %s203_s4, %s191_s5  }
  0x35   : > { %211 = sbr.rel (%p861_p8) target bundleno = 306 (0x132), region = 32  ;;  %s922_s8 = sand.u32 (!%p861_p8), 1, %s762_s13  }
  0x36   : > { %s511_s11 = sshll.u32 (!%p861_p8), %s922_s8, 2  ;;  %s214_s18 = scalar_lea.sflag (!%p861_p8), [#allocation3], %s922_s8 }
  0x37   : > { %s926_s26 = scalar_lea.vmem (!%p861_p8), [#allocation2], %s511_s11  ;;  %p1001_p12 = scmp.ne.s32.totalorder (!%p861_p8), %s994_s22, 0 }
  0x3a   : > { %745 = dma.done.wait (%p1001_p12), %s214_s18, 64  }
  0x3b   : > { %747 = vsyncadd (%p1001_p12), %s214_s18, 4294967232 }
  0x3c   : > { %749 = dma.done.wait (%p841_p1), [#allocation6], 1024  }
  0x3d   : > { %751 = vsyncadd (%p841_p1), [#allocation6], 4294966272  ;;  %v784_v0 = vmov 0.0   ;;  %vm785_vm0 = vmmov 0   ;;  %v632_v1 = vld [vmem:[#allocation5 + $0x38] sm:$0xff]   ;;  %v633_v2 = vld [vmem:[#allocation5 + $0x30] sm:$0xff]   ;;  %v258_v10 = vlaneseq }
  0x3e   : > { %535 = vmatprep.subr.bf16.mxu0 %v784_v0  ;;  %551 = vmatprep.mubr.msk.bf16.mxu0 %vm785_vm0, %v784_v0  ;;  %v634_v3 = vld [vmem:[#allocation5 + $0x28] sm:$0xff]   ;;  %v635_v4 = vld [vmem:[#allocation5 + $0x20] sm:$0xff]   ;;  %v636_v5 = vld [vmem:[#allocation5 + $0x18] sm:$0xff]   ;;  %s513_s24 = sshll.u32 %s922_s8, 3  ;;  %s523_s27 = sshll.u32 %s770_s15, 7 }
  0x3f   : > { %536 = vmatpush3.bf16.msra.mxu0 %v632_v1  ;;  %v637_v6 = vld [vmem:[#allocation5 + $0x10] sm:$0xff]   ;;  %v638_v7 = vld [vmem:[#allocation5 + $0x8] sm:$0xff]   ;;  %v639_v8 = vld [vmem:[#allocation5] sm:$0xff]   ;;  %v259_v11 = vshrl.u32 %v258_v10, 7  ;;  %s246_s29 = scalar_lea.vmem [#allocation7], %s513_s24  ;;  %s945_s5 = scalar_lea.hbm %s990_s3, %s523_s27 }
  0x40   : > { %537 = vmatprep.subr.bf16.mxu0 %v784_v0  ;;  %v264_v9 = vld [vmem:[%s926_s26] sm:$0xf]  ;;  %s393_s30 = sshll.u32 %s246_s29, 4  ;;  %s379_s6 = scalar_lea.sflag [#allocation4], %s922_s8  ;;  %s394_s30 = int_to_ptr.vmem [resolvable:$true] %s393_s30 }
  0x41   : > { %v256_v12 = vld [vmem:[%s989_s2] sm:$0x1]  ;;  %v260_v14 = vsub.s32 0, %v259_v11  ;;  %s694_s7 = scalar_lea.vmem %s394_s30, 128  ;;  %s786_s15 = smov [#allocation7]  }
  0x42   : > { %v257_v13 = vunpack.c.l.bf16 %v256_v12  ;;  %p695_p1 = scmp.ne.s32.totalorder %s394_s30, %s694_s7  ;;  %s698_s10 = sshll.u32 %s786_s15, 4  ;;  %s699_s10 = int_to_ptr.vmem [resolvable:$false] %s698_s10 }
  0x43   : > { %538 = vmatpush3.bf16.msra.mxu0 %v633_v2  ;;  %s700_s25 = scalar_lea.vmem %s699_s10, 256  ;;  %p701_p0 = scmp.lt.s32.totalorder %s394_s30, %s699_s10 }
  0x44   : > { %539 = vmatprep.subr.bf16.mxu0 %v784_v0  ;;  %v261_v15 = vrot.slane %v257_v13, %v260_v14  ;;  %p696_p8 = pnand %p695_p1, %p894_p13  ;;  %p702_p2 = scmp.lt.s32.totalorder %s700_s25, %s694_s7 }
  0x46   : > { %p697_p10 = pneg %p696_p8  ;;  %p703_p3 = por %p702_p2, %p701_p0 }
  0x47   : > { %540 = vmatpush3.bf16.msra.mxu0 %v634_v3 }
  0x48   : > { %541 = vmatprep.subr.bf16.mxu0 %v784_v0  ;;  %p704_p5 = pnand %p703_p3, %p697_p10 }
  0x4b   : > { %542 = vmatpush3.bf16.msra.mxu0 %v635_v4 }
  0x4c   : > { %543 = vmatprep.subr.bf16.mxu0 %v784_v0 }
  0x4f   : > { %544 = vmatpush3.bf16.msra.mxu0 %v636_v5 }
  0x50   : > { %545 = vmatprep.subr.bf16.mxu0 %v784_v0 }
  0x53   : > { %546 = vmatpush3.bf16.msra.mxu0 %v637_v6 }
  0x54   : > { %547 = vmatprep.subr.bf16.mxu0 %v784_v0 }
  0x57   : > { %548 = vmatpush3.bf16.msra.mxu0 %v638_v7 }
  0x58   : > { %549 = vmatprep.subr.bf16.mxu0 %v784_v0 }
  0x5b   : > { %550 = vmatpush3.bf16.msra.mxu0 %v639_v8 }
  0x5e   : > { %552 = vmatmul.mubr.bf16.vlgmr.msra.gmra.mxu0 %v264_v9 }
 0x11e   : > { %v363_v16 = vpop.f32.mrf.mxu0 }
 0x11f   : > { %v369_v17 = vadd.f32 %v363_v16, %v261_v15 }
 0x120   : > { %v553_v18 = vpop.f32.mrf.mxu0 }
 0x121   : > { %v375_v19 = vpack.c.bf16 %v369_v17, %v369_v17 }
 0x122   : > { %v366_v20 = vpop.f32.mrf.mxu0 }
 0x123   : > { %v376_v21 = vunpack.c.l.bf16 %v375_v19 }
 0x124   : > { %v554_v22 = vpop.f32.mrf.mxu0 }
 0x125   : > { %377 = vst [vmem:[%s246_s29] sm:$0xff] %v376_v21 }
 0x126   : > { %707 = shalt.err (!%p704_p5)
}
 0x127   : > { %s708_s11 = scalar_lea.hbm %s945_s5, 128  ;;  %s712_s26 = scalar_lea.hbm %s990_s3, 256 }
 0x128   : > { %p709_p7 = scmp.ne.s32.totalorder %s945_s5, %s708_s11  ;;  %p713_p9 = scmp.lt.s32.totalorder %s945_s5, %s990_s3 }
 0x129   : > { %p714_p11 = scmp.lt.s32.totalorder %s712_s26, %s708_s11 }
 0x12a   : > { %p710_p6 = pnand %p709_p7, %p894_p13 }
 0x12b   : > { %p715_p12 = por %p714_p11, %p713_p9 }
 0x12c   : > { %p711_p4 = pneg %p710_p6 }
 0x12e   : > { %p716_p1 = pnand %p715_p12, %p711_p4 }
 0x130   : > { %719 = shalt.err (!%p716_p1)
}
 0x131   : > { %561 = dma.vmem_to_hbm [thread:$0]  (%p894_p13), %s394_s30, 128, %s945_s5, %s379_s6  }
 0x132 PF: > { %s405_s24 = sand.u32 1, %s758_s12   ;;  %p1002_p8 = scmp.ne.s32.totalorder %s995_s23, 0 }
 0x133   : > { %p1003_p10 = scmp.ge.s32.totalorder %s778_s17, 2  ;;  %s406_s27 = scalar_lea.sflag [#allocation4], %s405_s24 }
 0x135   : > { %p572_p0 = pnand %p1003_p10, %p1002_p8 }
 0x137   : > { %p573_p2 = pneg %p572_p0 }
 0x139   : > { %753 = dma.done.wait (%p573_p2), %s406_s27, 128  }
 0x13a   : > { %755 = vsyncadd (%p573_p2), %s406_s27, 4294967168  ;;  %s20_s17 = sadd.s32 1, %s778_s17   ;;  %s1004_s12 = smov %s762_s13 }
 0x13b   : > { %p17_p3 = scmp.ge.s32.totalorder %s20_s17, 4   ;;  %s1005_s13 = smov %s766_s14 }
 0x13c   : > { %s1006_s14 = smov %s903_s19  ;;  %s1007_s15 = smov %s774_s16 }
 0x13d   : > { %s1008_s16 = smov %s1010_s28  ;;  %19 = sbr.rel (!%p17_p3) target bundleno = 7 (0x7), region = 93 }
 0x142   :  { %411 = vsyncpa [#allocation3], 1 }
 0x143   :  { %413 = vsyncpa [#allocation3 + $0x1], 1 }
 0x144   :  { %414 = vsyncpa [#allocation6], 1 }
 0x145   :  { %415 = vsyncpa [#allocation4], 1 }
 0x146   :  { %417 = vsyncpa [#allocation4 + $0x1], 1 }

</bundles_post_ra>
